<compile_context>
chip_gen: v5e
topology: v5e:2x2
jax: 0.10.0
libtpu: 0.0.40
codegen_flags: <defaults>
</compile_context>

<pallas_src>
import functools

import jax
import jax.numpy as jnp
from jax import lax
from jax.experimental import pallas as pl
from jax.experimental.pallas import tpu as pltpu  # noqa: F401  (TPU backend)

_BN_EPS = 1e-5
_LANES = 128


def _round_up(n, m):
    return ((n + m - 1) // m) * m


def _pad_last(a, n):
    pad = n - a.shape[-1]
    if pad == 0:
        return a
    return jnp.pad(a, [(0, 0)] * (a.ndim - 1) + [(0, pad)])


def _pad_first(a, n):
    pad = n - a.shape[0]
    if pad == 0:
        return a
    return jnp.pad(a, [(0, pad)] + [(0, 0)] * (a.ndim - 1))


def _batch_net_kernel(x_ref, w1_ref, w2_ref, w3_ref, vec_ref, o_ref):
    """x: (B, in_dim) f32; w*: bf16 padded; vec: (8, maxN) f32 packed rows:
    [b1, g1, be1, b2, g2, be2, b3, 0]."""
    h1p = w1_ref.shape[1]
    h2p = w2_ref.shape[1]
    op = w3_ref.shape[1]

    def bn_relu(h, g, be):
        # Training-mode BatchNorm1d folded into one scale/shift FMA:
        #   inv = rsqrt(var + eps)  (EUP)
        #   y   = max(h * (g*inv) + (be - mu*g*inv), 0)
        mu = jnp.mean(h, axis=0, keepdims=True)
        var = jnp.mean((h - mu) ** 2, axis=0, keepdims=True)
        scale = g * lax.rsqrt(var + _BN_EPS)
        shift = be - mu * scale
        return jnp.maximum(h * scale + shift, 0.0)

    # layer 1: Linear (bf16 operands, f32 accumulate) + BN + ReLU (f32 epilogue)
    x = x_ref[...].astype(jnp.bfloat16)          # in-kernel cast: free filler
    h = jnp.dot(x, w1_ref[...], preferred_element_type=jnp.float32)
    h = h + vec_ref[0:1, :h1p]
    h = bn_relu(h, vec_ref[1:2, :h1p], vec_ref[2:3, :h1p])

    # layer 2
    h = jnp.dot(h.astype(jnp.bfloat16), w2_ref[...],
                preferred_element_type=jnp.float32)
    h = h + vec_ref[3:4, :h2p]
    h = bn_relu(h, vec_ref[4:5, :h2p], vec_ref[5:6, :h2p])

    # layer 3: Linear only
    h = jnp.dot(h.astype(jnp.bfloat16), w3_ref[...],
                preferred_element_type=jnp.float32)
    o_ref[...] = (h + vec_ref[6:7, :op]).astype(o_ref.dtype)


def prepare_params(params):
    """One-time: pad feature dims to 128 lanes, cast weights to bf16, and pack
    the 7 per-feature vectors into a single (8, maxN) f32 array."""
    w1, b1, g1, be1 = params["w1"], params["b1"], params["g1"], params["be1"]
    w2, b2, g2, be2 = params["w2"], params["b2"], params["g2"], params["be2"]
    w3, b3 = params["w3"], params["b3"]

    h1, h2, out_dim = w1.shape[1], w2.shape[1], w3.shape[1]
    h1p = _round_up(h1, _LANES)
    h2p = _round_up(h2, _LANES)
    op = _round_up(out_dim, _LANES)
    max_n = max(h1p, h2p, op)

    w1p = _pad_last(w1, h1p).astype(jnp.bfloat16)
    w2p = _pad_last(_pad_first(w2, h1p), h2p).astype(jnp.bfloat16)
    w3p = _pad_last(_pad_first(w3, h2p), op).astype(jnp.bfloat16)

    def row(v):
        return _pad_last(v.reshape(1, -1).astype(jnp.float32), max_n)

    vecs = jnp.concatenate(
        [row(b1), row(g1), row(be1), row(b2), row(g2), row(be2), row(b3),
         jnp.zeros((1, max_n), jnp.float32)], axis=0)   # (8, maxN) vreg tile

    return {"w1": w1p, "w2": w2p, "w3": w3p, "vecs": vecs}


@functools.partial(jax.jit, static_argnames=("out_dim",))
def batch_net_forward(x, prep, out_dim):
    """x: (B, in_dim) float32.  prep: output of prepare_params."""
    # TODO(synk): if many microbatches exist, stack them along B before this
    # call — kernel time is flat up to B~128/256 rows, so batching is free.
    w1p, w2p, w3p, vecs = prep["w1"], prep["w2"], prep["w3"], prep["vecs"]
    B = x.shape[0]
    op = w3p.shape[1]

    full = lambda a: pl.BlockSpec(a.shape, lambda: (0,) * a.ndim)
    args = (x, w1p, w2p, w3p, vecs)

    out = pl.pallas_call(
        _batch_net_kernel,
        out_shape=jax.ShapeDtypeStruct((B, op), jnp.float32),
        grid=(),
        in_specs=[full(a) for a in args],
        out_specs=pl.BlockSpec((B, op), lambda: (0, 0)),
    )(*args)
    return out[:, :out_dim]


def init_params(key, in_dim, n_hidden_1, n_hidden_2, out_dim):
    """nn.Linear-style uniform init; BN gamma/beta perturbed off (1, 0) so the
    affine path is actually exercised by the correctness check."""
    ks = jax.random.split(key, 10)

    def linear(kw, kb, fan_in, fan_out):
        bound = 1.0 / jnp.sqrt(fan_in)
        w = jax.random.uniform(kw, (fan_in, fan_out), jnp.float32, -bound, bound)
        b = jax.random.uniform(kb, (1, fan_out), jnp.float32, -bound, bound)
        return w, b

    w1, b1 = linear(ks[0], ks[1], in_dim, n_hidden_1)
    w2, b2 = linear(ks[2], ks[3], n_hidden_1, n_hidden_2)
    w3, b3 = linear(ks[4], ks[5], n_hidden_2, out_dim)

    def bn(kg, kb, n):
        g = 1.0 + 0.1 * jax.random.normal(kg, (1, n), jnp.float32)
        b = 0.1 * jax.random.normal(kb, (1, n), jnp.float32)
        return g, b

    g1, be1 = bn(ks[6], ks[7], n_hidden_1)
    g2, be2 = bn(ks[8], ks[9], n_hidden_2)
    return {"w1": w1, "b1": b1, "g1": g1, "be1": be1,
            "w2": w2, "b2": b2, "g2": g2, "be2": be2,
            "w3": w3, "b3": b3}


def reference_forward(x, p):
    """Pure-JAX reference mirroring the kernel's precision policy
    (bf16 matmul operands, f32 accumulation, rsqrt-fused BN epilogue)."""
    bf = jnp.bfloat16

    def dot(a, w):
        return jnp.dot(a.astype(bf), w.astype(bf),
                       preferred_element_type=jnp.float32)

    def bn_relu(h, g, b):
        mu = jnp.mean(h, axis=0, keepdims=True)
        var = jnp.mean((h - mu) ** 2, axis=0, keepdims=True)
        scale = g * lax.rsqrt(var + _BN_EPS)
        return jnp.maximum(h * scale + (b - mu * scale), 0.0)

    h = bn_relu(dot(x, p["w1"]) + p["b1"], p["g1"], p["be1"])
    h = bn_relu(dot(h, p["w2"]) + p["b2"], p["g2"], p["be2"])
    return dot(h, p["w3"]) + p["b3"]


if __name__ == "__main__":
    key = jax.random.PRNGKey(0)
    k_x, k_p = jax.random.split(key)

    B, in_dim, n_hidden_1, n_hidden_2, out_dim = 8, 32, 64, 64, 16
    x = jax.random.normal(k_x, (B, in_dim), dtype=jnp.float32)
    params = init_params(k_p, in_dim, n_hidden_1, n_hidden_2, out_dim)

    prep = prepare_params(params)          # one-time pad / cast / pack
    prep = jax.tree_util.tree_map(jax.block_until_ready, prep)

    out = batch_net_forward(x, prep, out_dim)
    out = jax.block_until_ready(out)

    ref = reference_forward(x, params)
    assert out.shape == (B, out_dim)
    assert jnp.allclose(out, ref, atol=2e-3, rtol=2e-3), "mismatch vs reference"

    print("KERNEL_OK")
</pallas_src>

<mosaic_0001>
module attributes {stable_mosaic.version = 11 : i64} {
  func.func @_batch_net_kernel(%arg0: memref<8x32xf32, #tpu.memory_space<vmem>>, %arg1: memref<32x128xbf16, #tpu.memory_space<vmem>>, %arg2: memref<128x128xbf16, #tpu.memory_space<vmem>>, %arg3: memref<128x128xbf16, #tpu.memory_space<vmem>>, %arg4: memref<8x128xf32, #tpu.memory_space<vmem>>, %arg5: memref<8x128xf32, #tpu.memory_space<vmem>>) attributes {dimension_semantics = [], scalar_prefetch = 0 : i64, scratch_operands = 0 : i64, tpu.core_type = #tpu.core_type<tc>} {
    %c0 = arith.constant 0 : index
    %c0_0 = arith.constant 0 : index
    %0 = vector.load %arg0[%c0, %c0_0] : memref<8x32xf32, #tpu.memory_space<vmem>>, vector<8x32xf32>
    %1 = arith.truncf %0 : vector<8x32xf32> to vector<8x32xbf16>
    %c0_1 = arith.constant 0 : index
    %c0_2 = arith.constant 0 : index
    %2 = vector.load %arg1[%c0_1, %c0_2] : memref<32x128xbf16, #tpu.memory_space<vmem>>, vector<32x128xbf16>
    %cst = arith.constant dense<0.000000e+00> : vector<8x128xf32>
    %3 = tpu.matmul %1, %2, %cst {dimension_numbers = #tpu.dot_dimension_numbers<[1], [0], [0], [1], [0, 0, 1, 1], [], []>} : vector<8x32xbf16>, vector<32x128xbf16>, vector<8x128xf32> -> vector<8x128xf32>
    %c0_3 = arith.constant 0 : index
    %c0_4 = arith.constant 0 : index
    %4 = vector.load %arg4[%c0_3, %c0_4] : memref<8x128xf32, #tpu.memory_space<vmem>>, vector<1x128xf32>
    %5 = vector.broadcast %4 : vector<1x128xf32> to vector<8x128xf32>
    %6 = arith.addf %3, %5 : vector<8x128xf32>
    %c1 = arith.constant 1 : index
    %c0_5 = arith.constant 0 : index
    %7 = vector.load %arg4[%c1, %c0_5] : memref<8x128xf32, #tpu.memory_space<vmem>>, vector<1x128xf32>
    %c2 = arith.constant 2 : index
    %c0_6 = arith.constant 0 : index
    %8 = vector.load %arg4[%c2, %c0_6] : memref<8x128xf32, #tpu.memory_space<vmem>>, vector<1x128xf32>
    %cst_7 = arith.constant dense<0.000000e+00> : vector<128xf32>
    %9 = vector.multi_reduction <add>, %6, %cst_7 [0] : vector<8x128xf32> to vector<128xf32>
    %10 = vector.shape_cast %9 : vector<128xf32> to vector<1x128xf32>
    %cst_8 = arith.constant 8.000000e+00 : f32
    %11 = vector.broadcast %cst_8 : f32 to vector<1x128xf32>
    %12 = arith.divf %10, %11 : vector<1x128xf32>
    %13 = vector.broadcast %12 : vector<1x128xf32> to vector<8x128xf32>
    %14 = arith.subf %6, %13 : vector<8x128xf32>
    %15 = arith.mulf %14, %14 : vector<8x128xf32>
    %cst_9 = arith.constant dense<0.000000e+00> : vector<128xf32>
    %16 = vector.multi_reduction <add>, %15, %cst_9 [0] : vector<8x128xf32> to vector<128xf32>
    %17 = vector.shape_cast %16 : vector<128xf32> to vector<1x128xf32>
    %cst_10 = arith.constant 8.000000e+00 : f32
    %18 = vector.broadcast %cst_10 : f32 to vector<1x128xf32>
    %19 = arith.divf %17, %18 : vector<1x128xf32>
    %cst_11 = arith.constant 9.99999974E-6 : f32
    %20 = vector.broadcast %cst_11 : f32 to vector<1x128xf32>
    %21 = arith.addf %19, %20 : vector<1x128xf32>
    %22 = math.rsqrt %21 : vector<1x128xf32>
    %23 = arith.mulf %7, %22 : vector<1x128xf32>
    %24 = arith.mulf %12, %23 : vector<1x128xf32>
    %25 = arith.subf %8, %24 : vector<1x128xf32>
    %26 = vector.broadcast %23 : vector<1x128xf32> to vector<8x128xf32>
    %27 = arith.mulf %6, %26 : vector<8x128xf32>
    %28 = vector.broadcast %25 : vector<1x128xf32> to vector<8x128xf32>
    %29 = arith.addf %27, %28 : vector<8x128xf32>
    %cst_12 = arith.constant 0.000000e+00 : f32
    %30 = vector.broadcast %cst_12 : f32 to vector<8x128xf32>
    %31 = arith.maximumf %29, %30 : vector<8x128xf32>
    %32 = arith.truncf %31 : vector<8x128xf32> to vector<8x128xbf16>
    %c0_13 = arith.constant 0 : index
    %c0_14 = arith.constant 0 : index
    %33 = vector.load %arg2[%c0_13, %c0_14] : memref<128x128xbf16, #tpu.memory_space<vmem>>, vector<128x128xbf16>
    %cst_15 = arith.constant dense<0.000000e+00> : vector<8x128xf32>
    %34 = tpu.matmul %32, %33, %cst_15 {dimension_numbers = #tpu.dot_dimension_numbers<[1], [0], [0], [1], [0, 0, 1, 1], [], []>} : vector<8x128xbf16>, vector<128x128xbf16>, vector<8x128xf32> -> vector<8x128xf32>
    %c3 = arith.constant 3 : index
    %c0_16 = arith.constant 0 : index
    %35 = vector.load %arg4[%c3, %c0_16] : memref<8x128xf32, #tpu.memory_space<vmem>>, vector<1x128xf32>
    %36 = vector.broadcast %35 : vector<1x128xf32> to vector<8x128xf32>
    %37 = arith.addf %34, %36 : vector<8x128xf32>
    %c4 = arith.constant 4 : index
    %c0_17 = arith.constant 0 : index
    %38 = vector.load %arg4[%c4, %c0_17] : memref<8x128xf32, #tpu.memory_space<vmem>>, vector<1x128xf32>
    %c5 = arith.constant 5 : index
    %c0_18 = arith.constant 0 : index
    %39 = vector.load %arg4[%c5, %c0_18] : memref<8x128xf32, #tpu.memory_space<vmem>>, vector<1x128xf32>
    %cst_19 = arith.constant dense<0.000000e+00> : vector<128xf32>
    %40 = vector.multi_reduction <add>, %37, %cst_19 [0] : vector<8x128xf32> to vector<128xf32>
    %41 = vector.shape_cast %40 : vector<128xf32> to vector<1x128xf32>
    %cst_20 = arith.constant 8.000000e+00 : f32
    %42 = vector.broadcast %cst_20 : f32 to vector<1x128xf32>
    %43 = arith.divf %41, %42 : vector<1x128xf32>
    %44 = vector.broadcast %43 : vector<1x128xf32> to vector<8x128xf32>
    %45 = arith.subf %37, %44 : vector<8x128xf32>
    %46 = arith.mulf %45, %45 : vector<8x128xf32>
    %cst_21 = arith.constant dense<0.000000e+00> : vector<128xf32>
    %47 = vector.multi_reduction <add>, %46, %cst_21 [0] : vector<8x128xf32> to vector<128xf32>
    %48 = vector.shape_cast %47 : vector<128xf32> to vector<1x128xf32>
    %cst_22 = arith.constant 8.000000e+00 : f32
    %49 = vector.broadcast %cst_22 : f32 to vector<1x128xf32>
    %50 = arith.divf %48, %49 : vector<1x128xf32>
    %cst_23 = arith.constant 9.99999974E-6 : f32
    %51 = vector.broadcast %cst_23 : f32 to vector<1x128xf32>
    %52 = arith.addf %50, %51 : vector<1x128xf32>
    %53 = math.rsqrt %52 : vector<1x128xf32>
    %54 = arith.mulf %38, %53 : vector<1x128xf32>
    %55 = arith.mulf %43, %54 : vector<1x128xf32>
    %56 = arith.subf %39, %55 : vector<1x128xf32>
    %57 = vector.broadcast %54 : vector<1x128xf32> to vector<8x128xf32>
    %58 = arith.mulf %37, %57 : vector<8x128xf32>
    %59 = vector.broadcast %56 : vector<1x128xf32> to vector<8x128xf32>
    %60 = arith.addf %58, %59 : vector<8x128xf32>
    %cst_24 = arith.constant 0.000000e+00 : f32
    %61 = vector.broadcast %cst_24 : f32 to vector<8x128xf32>
    %62 = arith.maximumf %60, %61 : vector<8x128xf32>
    %63 = arith.truncf %62 : vector<8x128xf32> to vector<8x128xbf16>
    %c0_25 = arith.constant 0 : index
    %c0_26 = arith.constant 0 : index
    %64 = vector.load %arg3[%c0_25, %c0_26] : memref<128x128xbf16, #tpu.memory_space<vmem>>, vector<128x128xbf16>
    %cst_27 = arith.constant dense<0.000000e+00> : vector<8x128xf32>
    %65 = tpu.matmul %63, %64, %cst_27 {dimension_numbers = #tpu.dot_dimension_numbers<[1], [0], [0], [1], [0, 0, 1, 1], [], []>} : vector<8x128xbf16>, vector<128x128xbf16>, vector<8x128xf32> -> vector<8x128xf32>
    %c6 = arith.constant 6 : index
    %c0_28 = arith.constant 0 : index
    %66 = vector.load %arg4[%c6, %c0_28] : memref<8x128xf32, #tpu.memory_space<vmem>>, vector<1x128xf32>
    %67 = vector.broadcast %66 : vector<1x128xf32> to vector<8x128xf32>
    %68 = arith.addf %65, %67 : vector<8x128xf32>
    %c0_29 = arith.constant 0 : index
    %c0_30 = arith.constant 0 : index
    %69 = vector.load %arg5[%c0_29, %c0_30] : memref<8x128xf32, #tpu.memory_space<vmem>>, vector<8x128xf32>
    tpu.vector_store %arg5[%c0_29, %c0_30], %68 {strides = array<i32>} : memref<8x128xf32, #tpu.memory_space<vmem>>, vector<8x128xf32>,
    return
  }
}

</mosaic_0001>

<bundles_post_ra>
// kernel: batch_net_forward.1
= control target key start
LH: loop header
LB: loop body
LE: loop exit
PB: predicated region body
PF: predicated region fallthrough
CT: control target
= control target key end

     0   :  { %10 = vsyncpa [#allocation3], 0  ;;  %s718_s0 = inlined_call_operand.hbm [shape: f32[8,32], index: 0, kind: input, shape index: {}]   ;;  %s719_s1 = inlined_call_operand.hbm [shape: bf16[32,128], index: 1, kind: input, shape index: {}]   ;;  %s720_s2 = inlined_call_operand.hbm [shape: bf16[128,128], index: 2, kind: input, shape index: {}]   ;;  %s721_s3 = inlined_call_operand.hbm [shape: bf16[128,128], index: 3, kind: input, shape index: {}]   ;;  %s722_s4 = inlined_call_operand.hbm [shape: f32[8,128], index: 4, kind: input, shape index: {}]   ;;  %s723_s5 = inlined_call_operand.hbm [shape: f32[8,128], index: 5, kind: output, shape index: {}]  }
   0x1   :  { %11 = vsyncpa [#allocation6], 0 }
   0x2   :  { %12 = vsyncpa [#allocation9], 0  ;;  %s29_s20 = sshll.u32 %s719_s1, 4  ;;  %s30_s20 = int_to_ptr.hbm [resolvable:$true] %s29_s20 }
   0x3   :  { %13 = vsyncpa [#allocation4], 0  ;;  %s655_s21 = smov [#allocation5]   ;;  %s55_s25 = sshll.u32 %s721_s3, 4  ;;  %s56_s25 = int_to_ptr.hbm [resolvable:$true] %s55_s25 }
   0x4   :  { %s31_s22 = sshll.u32 %s655_s21, 4  ;;  %s656_s26 = smov 64   ;;  %s32_s22 = int_to_ptr.vmem [resolvable:$true] %s31_s22 }
   0x5   :  { %s657_s27 = smov 4   ;;  %s658_s28 = smov [#allocation8]  }
   0x6   :  { %37 = dma.hbm_to_vmem [thread:$0]  %s30_s20, 256, %s32_s22, [#allocation6], %s656_s26, %s656_s26, %s657_s27  }
   0x7   :  { %s57_s29 = sshll.u32 %s658_s28, 4  ;;  %s19_s7 = sshll.u32 %s718_s0, 4  ;;  %s58_s29 = int_to_ptr.vmem [resolvable:$true] %s57_s29  ;;  %s20_s7 = int_to_ptr.hbm [resolvable:$true] %s19_s7 }
   0x8   :  { %63 = dma.hbm_to_vmem [thread:$0]  %s56_s25, 1024, %s58_s29, [#allocation9], %s656_s26, %s656_s26, %s657_s27  }
   0x9   :  { %s42_s9 = sshll.u32 %s720_s2, 4  ;;  %s659_s10 = smov [#allocation2]   ;;  %s43_s9 = int_to_ptr.hbm [resolvable:$true] %s42_s9 }
   0xa   :  { %s21_s11 = sshll.u32 %s659_s10, 4  ;;  %s660_s3 = smov [#allocation7]   ;;  %s22_s11 = int_to_ptr.vmem [resolvable:$true] %s21_s11 }
   0xb   :  { %24 = dma.hbm_to_vmem [thread:$0]  %s20_s7, 128, %s22_s11, [#allocation3]  }
   0xc   :  { %s44_s12 = sshll.u32 %s660_s3, 4  ;;  %s69_s15 = sshll.u32 %s722_s4, 4  ;;  %s45_s12 = int_to_ptr.vmem [resolvable:$true] %s44_s12  ;;  %s70_s15 = int_to_ptr.hbm [resolvable:$true] %s69_s15 }
   0xd   :  { %50 = dma.hbm_to_vmem [thread:$0]  %s43_s9, 1024, %s45_s12, [#allocation6], %s656_s26, %s656_s26, %s657_s27  }
   0xe   :  { %s661_s0 = smov [#allocation10]  }
   0xf   :  { %s71_s16 = sshll.u32 %s661_s0, 4  ;;  %s72_s16 = int_to_ptr.vmem [resolvable:$true] %s71_s16 }
  0x10   :  { %74 = dma.hbm_to_vmem [thread:$0]  %s70_s15, 128, %s72_s16, [#allocation9]  }
  0x11   :  { %647 = dma.done.wait [#allocation3], 128  }
  0x12   :  { %648 = vsyncadd [#allocation3], 4294967168 }
  0x13   :  { %649 = dma.done.wait [#allocation6], 1280  }
  0x14   :  { %650 = vsyncadd [#allocation6], 4294966016 }
  0x15   :  { %651 = dma.done.wait [#allocation9], 1152  }
  0x16   :  { %652 = vsyncadd [#allocation9], 4294966144  ;;  %v468_v0 = vld [vmem:[#allocation5 + $0x8] sm:$0xff]  ;;  %v467_v1 = vld [vmem:[#allocation5] sm:$0xff]  ;;  %vm116_vm0 = vcmask 261120   ;;  %v662_v4 = vmov 8.0  }
  0x17   :  { %126 = vmatpush.bf16.msra.mxu0 %v468_v0  ;;  %v96_v2 = vld [vmem:[#allocation2] sm:$0xff]  ;;  %497 = vrcp.f32 %v662_v4  ;;  %v494_v7 = vld [vmem:[#allocation10] ss:$0 sm:$0xff]  ;;  %v476_v11 = vld [vmem:[#allocation7 + $0x38] sm:$0xff]  ;;  %s663_s2 = smov [#allocation11]   ;;  %s382_s19 = sshll.u32 %s723_s5, 4  ;;  %s383_s19 = int_to_ptr.hbm [resolvable:$true] %s382_s19 }
  0x18   :  { %v97_v3 = vpack.c.bf16 %v96_v2, %v96_v2  ;;  %244 = vmatpush.bf16.msra.mxu1 %v476_v11  ;;  %v475_v13 = vld [vmem:[#allocation7 + $0x30] sm:$0xff]  ;;  %v474_v17 = vld [vmem:[#allocation7 + $0x28] sm:$0xff]  ;;  %v473_v22 = vld [vmem:[#allocation7 + $0x20] sm:$0xff]  ;;  %s380_s4 = sshll.u32 %s663_s2, 4  ;;  %s381_s4 = int_to_ptr.vmem [resolvable:$true] %s380_s4 }
  0x19   :  { %v472_v26 = vld [vmem:[#allocation7 + $0x18] sm:$0xff]  ;;  %v471_v29 = vld [vmem:[#allocation7 + $0x10] sm:$0xff]  ;;  %v470_v32 = vld [vmem:[#allocation7 + $0x8] sm:$0xff] }
  0x1a   :  { %v469_v35 = vld [vmem:[#allocation7] sm:$0xff]  ;;  %v484_v61 = vld [vmem:[#allocation8 + $0x38] sm:$0xff]  ;;  %v483_v63 = vld [vmem:[#allocation8 + $0x30] sm:$0xff] }
  0x1b   :  { %127 = vmatpush.bf16.msra.mxu0 %v467_v1  ;;  %v133_v45 = vld [vmem:[#allocation10 + $0x1] sm:$0x1]  ;;  %v134_v49 = vld [vmem:[#allocation10 + $0x2] sm:$0x1]  ;;  %v495_v58 = vld [vmem:[#allocation10 + $0x3] ss:$0 sm:$0xff]  ;;  %361 = vmatpush.bf16.msra.mxu2 %v484_v61 }
  0x1c   :  { %245 = vmatpush.bf16.msra.mxu1 %v475_v13  ;;  %v482_v2 = vld [vmem:[#allocation8 + $0x28] sm:$0xff] }
  0x1d   :  { %v498_v5 = vpop.eup %497 }
  0x1e   :  { %402 = vmatmul.msk.bf16.vlgmr.msra.gmra.mxu0 %vm116_vm0, %v97_v3  ;;  %v142_v6 = vmul.f32 8.0, %v498_v5  ;;  %vm146_vm1 = vweird.f32 %v498_v5 }
  0x1f   :  { %362 = vmatpush.bf16.msra.mxu2 %v483_v63 }
  0x20   :  { %v143_v9 = vsub.f32 1.0, %v142_v6  ;;  %246 = vmatpush.bf16.msra.mxu1 %v474_v17  ;;  %v481_v6 = vld [vmem:[#allocation8 + $0x20] sm:$0xff] }
  0x22   :  { %v144_v14 = vmul.f32 %v498_v5, %v143_v9  ;;  %v480_v9 = vld [vmem:[#allocation8 + $0x18] sm:$0xff] }
  0x23   :  { %363 = vmatpush.bf16.msra.mxu2 %v482_v2 }
  0x24   :  { %v145_v18 = vadd.f32 %v498_v5, %v144_v14  ;;  %247 = vmatpush.bf16.msra.mxu1 %v473_v22 }
  0x26   :  { %v709_v23 = vsel %vm146_vm1, %v498_v5, %v145_v18  ;;  %v477_v18 = vld [vmem:[#allocation8] sm:$0xff] }
  0x27   :  { %364 = vmatpush.bf16.msra.mxu2 %v481_v6 }
  0x28   :  { %248 = vmatpush.bf16.msra.mxu1 %v472_v26 }
  0x2b   :  { %365 = vmatpush.bf16.msra.mxu2 %v480_v9 }
  0x2c   :  { %249 = vmatpush.bf16.msra.mxu1 %v471_v29  ;;  %v257_v29 = vld [vmem:[#allocation10 + $0x4] sm:$0x1] }
  0x30   :  { %250 = vmatpush.bf16.msra.mxu1 %v470_v32 }
  0x34   :  { %251 = vmatpush.bf16.msra.mxu1 %v469_v35 }
  0x9b   :  { %v129_v8 = vpop.f32.mrf.mxu0 }
  0x9c   :  { %v130_v10 = vadd.f32 %v494_v7, %v129_v8 }
  0x9e   :  { %v135_v12 = vrot.slane %v130_v10, 4 }
  0xa0   :  { %v136_v15 = vadd.f32 %v135_v12, %v130_v10  ;;  %v479_v12 = vld [vmem:[#allocation8 + $0x10] sm:$0xff] }
  0xa1   :  { %366 = vmatpush.bf16.msra.mxu2 %v479_v12 }
  0xa2   :  { %v137_v16 = vrot.slane %v136_v15, 2 }
  0xa3   :  { %v131_v19 = vpop.f32.mrf.mxu0 }
  0xa4   :  { %v138_v20 = vadd.f32 %v137_v16, %v136_v15  ;;  %v478_v15 = vld [vmem:[#allocation8 + $0x8] sm:$0xff] }
  0xa5   :  { %367 = vmatpush.bf16.msra.mxu2 %v478_v15 }
  0xa6   :  { %v139_v21 = vrot.slane %v138_v20, 1 }
  0xa8   :  { %v140_v24 = vadd.f32 %v139_v21, %v138_v20 }
  0xa9   :  { %368 = vmatpush.bf16.msra.mxu2 %v477_v18 }
  0xaa   :  { %v148_v25 = vmul.f32 %v709_v23, %v140_v24 }
  0xac   :  { %v149_v27 = vsub.f32 %v130_v10, %v148_v25 }
  0xae   :  { %v150_v28 = vmul.f32 %v149_v27, %v149_v27 }
  0xb0   :  { %v151_v30 = vrot.slane %v150_v28, 4 }
  0xb2   :  { %v152_v31 = vadd.f32 %v151_v30, %v150_v28 }
  0xb4   :  { %v153_v33 = vrot.slane %v152_v31, 2 }
  0xb6   :  { %v154_v34 = vadd.f32 %v153_v33, %v152_v31  ;;  %v258_v33 = vld [vmem:[#allocation10 + $0x5] sm:$0x1] }
  0xb8   :  { %v155_v36 = vrot.slane %v154_v34, 1 }
  0xba   :  { %v156_v37 = vadd.f32 %v155_v36, %v154_v34 }
  0xbc   :  { %v157_v38 = vmul.f32 %v156_v37, %v709_v23 }
  0xbe   :  { %v158_v39 = vadd.f32 1e-05, %v157_v38 }
  0xc0   :  { %499 = vrsqrt.f32 %v158_v39  ;;  %vm165_vm3 = vweird.f32 %v158_v39 }
  0xc6   :  { %v500_v40 = vpop.eup %499 }
  0xc7   :  { %v160_v41 = vmul.f32 %v500_v40, %v158_v39  ;;  %vm166_vm2 = vweird.f32 %v500_v40 }
  0xc8   :  { %vm167_vm4 = vmor %vm165_vm3, %vm166_vm2 }
  0xc9   :  { %v161_v42 = vmul.f32 %v500_v40, %v160_v41  ;;  %v496_v41 = vld [vmem:[#allocation10 + $0x6] ss:$0 sm:$0xff] }
  0xcb   :  { %v162_v43 = vmul.f32 0.5, %v161_v42 }
  0xcd   :  { %v163_v44 = vsub.f32 1.5, %v162_v43 }
  0xcf   :  { %v164_v46 = vmul.f32 %v500_v40, %v163_v44 }
  0xd1   :  { %v168_v47 = vsel %vm167_vm4, %v500_v40, %v164_v46 }
  0xd2   :  { %v169_v48 = vmul.f32 %v168_v47, %v133_v45 }
  0xd4   :  { %v170_v50 = vmul.f32 %v169_v48, %v148_v25  ;;  %v172_v51 = vperm.slane %v169_v48, 0 }
  0xd6   :  { %v171_v52 = vsub.f32 %v134_v49, %v170_v50  ;;  %v173_v53 = vmul.f32 %v172_v51, %v130_v10 }
  0xd8   :  { %v174_v54 = vperm.slane %v171_v52, 0 }
  0xda   :  { %v175_v55 = vadd.f32 %v174_v54, %v173_v53 }
  0xdc   :  { %v176_v56 = vmax.f32 %v175_v55, 0.0 }
  0xde   :  { %v177_v57 = vpack.c.bf16 %v176_v56, %v176_v56 }
  0xe0   :  { %252 = vmatmul.bf16.vlgmr.msra.gmra.mxu1 %v177_v57 }
 0x15d   :  { %v253_v59 = vpop.f32.mrf.mxu1 }
 0x15e   :  { %v254_v60 = vadd.f32 %v495_v58, %v253_v59 }
 0x160   :  { %v259_v62 = vrot.slane %v254_v60, 4 }
 0x162   :  { %v260_v0 = vadd.f32 %v259_v62, %v254_v60 }
 0x164   :  { %v261_v1 = vrot.slane %v260_v0, 2 }
 0x165   :  { %v255_v3 = vpop.f32.mrf.mxu1 }
 0x166   :  { %v262_v4 = vadd.f32 %v261_v1, %v260_v0 }
 0x168   :  { %v263_v5 = vrot.slane %v262_v4, 1 }
 0x16a   :  { %v264_v7 = vadd.f32 %v263_v5, %v262_v4 }
 0x16c   :  { %v265_v8 = vmul.f32 %v264_v7, %v709_v23 }
 0x16e   :  { %v266_v10 = vsub.f32 %v254_v60, %v265_v8 }
 0x170   :  { %v267_v11 = vmul.f32 %v266_v10, %v266_v10 }
 0x172   :  { %v268_v13 = vrot.slane %v267_v11, 4 }
 0x174   :  { %v269_v14 = vadd.f32 %v268_v13, %v267_v11 }
 0x176   :  { %v270_v16 = vrot.slane %v269_v14, 2 }
 0x178   :  { %v271_v17 = vadd.f32 %v270_v16, %v269_v14 }
 0x17a   :  { %v272_v19 = vrot.slane %v271_v17, 1 }
 0x17c   :  { %v273_v20 = vadd.f32 %v272_v19, %v271_v17 }
 0x17e   :  { %v274_v21 = vmul.f32 %v273_v20, %v709_v23 }
 0x180   :  { %v275_v22 = vadd.f32 1e-05, %v274_v21 }
 0x182   :  { %501 = vrsqrt.f32 %v275_v22  ;;  %vm282_vm6 = vweird.f32 %v275_v22 }
 0x188   :  { %v502_v24 = vpop.eup %501 }
 0x189   :  { %v277_v25 = vmul.f32 %v502_v24, %v275_v22  ;;  %vm283_vm5 = vweird.f32 %v502_v24 }
 0x18a   :  { %vm284_vm7 = vmor %vm282_vm6, %vm283_vm5 }
 0x18b   :  { %v278_v26 = vmul.f32 %v502_v24, %v277_v25 }
 0x18d   :  { %v279_v27 = vmul.f32 0.5, %v278_v26 }
 0x18f   :  { %v280_v28 = vsub.f32 1.5, %v279_v27 }
 0x191   :  { %v281_v30 = vmul.f32 %v502_v24, %v280_v28 }
 0x193   :  { %v285_v31 = vsel %vm284_vm7, %v502_v24, %v281_v30 }
 0x194   :  { %v286_v32 = vmul.f32 %v285_v31, %v257_v29 }
 0x196   :  { %v287_v34 = vmul.f32 %v286_v32, %v265_v8  ;;  %v289_v35 = vperm.slane %v286_v32, 0 }
 0x198   :  { %v288_v36 = vsub.f32 %v258_v33, %v287_v34  ;;  %v290_v37 = vmul.f32 %v289_v35, %v254_v60 }
 0x19a   :  { %v291_v23 = vperm.slane %v288_v36, 0 }
 0x19c   :  { %v292_v38 = vadd.f32 %v291_v23, %v290_v37 }
 0x19e   :  { %v293_v39 = vmax.f32 %v292_v38, 0.0 }
 0x1a0   :  { %v294_v40 = vpack.c.bf16 %v293_v39, %v293_v39 }
 0x1a2   :  { %369 = vmatmul.bf16.vlgmr.msra.gmra.mxu2 %v294_v40 }
 0x225   :  { %v370_v42 = vpop.f32.mrf.mxu2 }
 0x226   :  { %v371_v43 = vadd.f32 %v496_v41, %v370_v42 }
 0x228   :  { %374 = vst [vmem:[#allocation11] sm:$0xff] %v371_v43 }
 0x229   :  { %385 = dma.vmem_to_hbm [thread:$0]  %s381_s4, 128, %s383_s19, [#allocation4]  }
 0x22d   :  { %v372_v44 = vpop.f32.mrf.mxu2 }
 0x22e   :  { %653 = dma.done.wait [#allocation4], 128  }
 0x22f   :  { %654 = vsyncadd [#allocation4], 4294967168 }
 0x230   :  { %390 = vsyncpa [#allocation3], 1 }
 0x231   :  { %391 = vsyncpa [#allocation6], 1 }
 0x232   :  { %392 = vsyncpa [#allocation9], 1 }
 0x233   :  { %393 = vsyncpa [#allocation4], 1 }

</bundles_post_ra>
